<compile_context>
chip_gen: v6e
topology: v6e:2x2x1
jax: 0.10.0
libtpu: 0.0.40
codegen_flags: <defaults>
</compile_context>

<pallas_src>
import functools
import numpy as np

import jax
import jax.numpy as jnp
from jax.experimental import pallas as pl
from jax.experimental.pallas import tpu as pltpu

EPS = 1e-5                       # torch.nn.LayerNorm default
_VMEM_LIMIT = 60 * 1024 * 1024   # > default scoped limit (16/32 MiB), < v7x physical 64 MiB


def _round_up(x, m):
    return (x + m - 1) // m * m


# -----------------------------------------------------------------------------
# Shared math (traced inside the Pallas kernels AND by the pure-JAX reference,
# so both compute the same bf16-matmul / f32-accumulate graph).
# -----------------------------------------------------------------------------
def _layernorm(x, gamma, beta):
    xf = x.astype(jnp.float32)
    mu = jnp.mean(xf, axis=-1, keepdims=True)
    var = jnp.mean((xf - mu) ** 2, axis=-1, keepdims=True)
    return (xf - mu) * jax.lax.rsqrt(var + EPS) * gamma + beta


def _quick_gelu(x):
    return x * jax.nn.sigmoid(1.702 * x)


def _softmax_last(s, approx_recip):
    s = s - jnp.max(s, axis=-1, keepdims=True)
    e = jnp.exp(s)
    d = jnp.sum(e, axis=-1, keepdims=True)
    if approx_recip:                       # EUP reciprocal, only used inside kernels
        return e * pl.reciprocal(d, approx=True)
    return e / d


def _attention(x, wqkv_t, bqkv, wo_t, bo, *, n_head, valid_len, approx_recip):
    """Head-batched multi-head self-attention on one (padded) sequence x: [Lp, E]."""
    Lp, E = x.shape
    hd = E // n_head
    scale = 1.0 / np.sqrt(hd)

    # One wide QKV projection: [Lp, E] @ [E, 3E]  (bf16 operands, f32 accum).
    qkv = jnp.dot(x.astype(jnp.bfloat16), wqkv_t,
                  preferred_element_type=jnp.float32) + bqkv            # [Lp, 3E] f32
    q2 = qkv[:, 0 * E:1 * E] * scale
    k2 = qkv[:, 1 * E:2 * E]
    v2 = qkv[:, 2 * E:3 * E]

    # Build [n_head, Lp, hd] via lane-slices stacked along a new leading (major)
    # dim — avoids transposes that mix tiled and untiled dims.
    def split_heads(a):
        return jnp.stack([a[:, h * hd:(h + 1) * hd] for h in range(n_head)],
                         axis=0).astype(jnp.bfloat16)

    q3, k3, v3 = split_heads(q2), split_heads(k2), split_heads(v2)

    # Batched scores + PV (single MXU dot_general each, batch dim = heads).
    s = jnp.einsum('hqd,hkd->hqk', q3, k3,
                   preferred_element_type=jnp.float32)                  # [nh, Lp, Lp]
    if valid_len < Lp:                                                  # mask padded keys
        col = jax.lax.broadcasted_iota(jnp.int32, (1, 1, Lp), 2)
        s = s + jnp.where(col < valid_len, 0.0, -1e30).astype(jnp.float32)
    p = _softmax_last(s, approx_recip)
    o3 = jnp.einsum('hqk,hkd->hqd', p.astype(jnp.bfloat16), v3,
                    preferred_element_type=jnp.float32)                 # [nh, Lp, hd]

    # Concatenate heads once, then a single full-width out-projection.
    o = jnp.concatenate([o3[h] for h in range(n_head)], axis=-1)        # [Lp, E]
    return jnp.dot(o.astype(jnp.bfloat16), wo_t,
                   preferred_element_type=jnp.float32) + bo


_W_NAMES = ("ln1_g", "ln1_b", "wqkv_t", "bqkv", "wo_t", "bo",
            "ln2_g", "ln2_b", "w1_t", "b1", "w2_t", "b2")


def _block_math(x, w, *, n_head, valid_len, approx_recip):
    """ResidualAttentionBlock on a single (padded) sequence x: [Lp, E]."""
    ln1 = _layernorm(x, w["ln1_g"], w["ln1_b"])
    x = x + _attention(ln1, w["wqkv_t"], w["bqkv"], w["wo_t"], w["bo"],
                       n_head=n_head, valid_len=valid_len, approx_recip=approx_recip)
    ln2 = _layernorm(x, w["ln2_g"], w["ln2_b"])
    h = jnp.dot(ln2.astype(jnp.bfloat16), w["w1_t"],
                preferred_element_type=jnp.float32) + w["b1"]
    h = _quick_gelu(h)
    h = jnp.dot(h.astype(jnp.bfloat16), w["w2_t"],
                preferred_element_type=jnp.float32) + w["b2"]
    return x + h


# -----------------------------------------------------------------------------
# Pallas kernels
# -----------------------------------------------------------------------------
def patch_embed_kernel(p_ref, w_ref, out_ref):
    # [tm, Kp] @ [Kp, width]  (the stride-p conv as an im2col matmul), bf16->f32
    out_ref[...] = jnp.dot(p_ref[...], w_ref[...],
                           preferred_element_type=jnp.float32)


def block_kernel(*refs, n_head, valid_len, fuse_pre, fuse_post, approx_recip=True):
    """Fused ResidualAttentionBlock (+ optional pre_ln / ln_post+proj epilogue)."""
    idx = 0
    x_ref = refs[idx]; idx += 1
    if fuse_pre:
        pos_ref, preg_ref, preb_ref = refs[idx:idx + 3]; idx += 3
    w = {name: refs[idx + i][...] for i, name in enumerate(_W_NAMES)}
    idx += len(_W_NAMES)
    if fuse_post:
        postg_ref, postb_ref, proj_ref = refs[idx:idx + 3]; idx += 3
    out_ref = refs[idx]

    x = x_ref[...]                                        # [Lp, E] (batch dim squeezed)
    if fuse_pre:                                          # + positional emb, ln_pre
        x = _layernorm(x + pos_ref[...], preg_ref[...], preb_ref[...])
    x = _block_math(x, w, n_head=n_head, valid_len=valid_len,
                    approx_recip=approx_recip)
    if fuse_post:                                         # ln_post on CLS row, @ proj
        cls = _layernorm(x[0:1, :], postg_ref[...], postb_ref[...])
        out_ref[...] = jnp.dot(cls.astype(jnp.bfloat16), proj_ref[...],
                               preferred_element_type=jnp.float32)       # [1, out_dim]
    else:
        out_ref[...] = x


# -----------------------------------------------------------------------------
# Pallas wrappers
# -----------------------------------------------------------------------------
def patch_embed(patches, w_patch, *, tile_m=256):
    """[M, K] @ [K, width] with M tiled on the grid and K zero-padded to 128-multiple."""
    M, K = patches.shape
    width = w_patch.shape[1]
    Kp = _round_up(K, 128)
    tm = tile_m if M >= tile_m else _round_up(M, 8)
    Mp = _round_up(M, tm)
    p = jnp.pad(patches.astype(jnp.bfloat16), ((0, Mp - M), (0, Kp - K)))
    w = jnp.pad(w_patch.astype(jnp.bfloat16), ((0, Kp - K), (0, 0)))
    out = pl.pallas_call(
        patch_embed_kernel,
        out_shape=jax.ShapeDtypeStruct((Mp, width), jnp.float32),
        grid=(Mp // tm,),
        in_specs=[pl.BlockSpec((tm, Kp), lambda i: (i, 0)),
                  pl.BlockSpec((Kp, width), lambda i: (0, 0))],   # weight stays resident
        out_specs=pl.BlockSpec((tm, width), lambda i: (i, 0)),
        compiler_params=pltpu.CompilerParams(
            dimension_semantics=("parallel",),
            vmem_limit_bytes=_VMEM_LIMIT),
    )(p, w)
    return out[:M]


def run_block(x, w, *, n_head, valid_len, pre=None, post=None):
    """One fused transformer block over the batch; grid=(B,), batch axis 'parallel'.

    pre  = (pos, ln_pre_g, ln_pre_b)    -> fuse pos-add + ln_pre in front
    post = (ln_post_g, ln_post_b, proj) -> fuse ln_post + projection of the CLS row
    """
    B, Lp, E = x.shape
    fuse_pre, fuse_post = pre is not None, post is not None

    inputs = [x]
    if fuse_pre:
        inputs += list(pre)
    inputs += [w[n] for n in _W_NAMES]
    if fuse_post:
        inputs += list(post)

    def const_spec(a):
        # Full-array block with a constant index map: fetched once, never re-DMA'd.
        return pl.BlockSpec(a.shape, lambda b, _n=a.ndim: (0,) * _n)

    in_specs = ([pl.BlockSpec((None, Lp, E), lambda b: (b, 0, 0))]
                + [const_spec(a) for a in inputs[1:]])

    if fuse_post:
        out_dim = post[2].shape[1]
        out_shape = jax.ShapeDtypeStruct((B, 1, out_dim), jnp.float32)
        out_specs = pl.BlockSpec((None, 1, out_dim), lambda b: (b, 0, 0))
    else:
        out_shape = jax.ShapeDtypeStruct((B, Lp, E), jnp.float32)
        out_specs = pl.BlockSpec((None, Lp, E), lambda b: (b, 0, 0))

    kernel = functools.partial(block_kernel, n_head=n_head, valid_len=valid_len,
                               fuse_pre=fuse_pre, fuse_post=fuse_post)
    return pl.pallas_call(
        kernel,
        out_shape=out_shape,
        grid=(B,),
        in_specs=in_specs,
        out_specs=out_specs,
        compiler_params=pltpu.CompilerParams(
            dimension_semantics=("parallel",),
            vmem_limit_bytes=_VMEM_LIMIT),
    )(*inputs)


def _prepare_block_weights(lp):
    """Pre-transpose the matmul weights once (no in-kernel `.T`) and cast to bf16."""
    return {
        "ln1_g": lp["ln1_g"], "ln1_b": lp["ln1_b"],
        "wqkv_t": lp["wqkv"].T.astype(jnp.bfloat16), "bqkv": lp["bqkv"],
        "wo_t": lp["wo"].T.astype(jnp.bfloat16), "bo": lp["bo"],
        "ln2_g": lp["ln2_g"], "ln2_b": lp["ln2_b"],
        "w1_t": lp["w1"].T.astype(jnp.bfloat16), "b1": lp["b1"],
        "w2_t": lp["w2"].T.astype(jnp.bfloat16), "b2": lp["b2"],
    }


def vit_forward(params, x, *, patch_size, heads, layers):
    B, C, H, W = x.shape
    gh, gw = H // patch_size, W // patch_size
    Np = gh * gw
    width = params["conv_w"].shape[0]
    L = Np + 1
    Lp = _round_up(L, 8)      # sublane-align the token axis (padded keys masked in attention)

    # --- im2col (glue): stride-p conv == matmul over flattened (c, kh, kw) patches
    patches = x.reshape(B, C, gh, patch_size, gw, patch_size)
    patches = patches.transpose(0, 2, 4, 1, 3, 5).reshape(B * Np, C * patch_size * patch_size)
    w_patch = params["conv_w"].reshape(width, -1).T                    # [C*p*p, width]
    emb = patch_embed(patches, w_patch).reshape(B, Np, width)

    # --- prepend CLS token, pad sequence axis (glue)
    cls = jnp.broadcast_to(params["cls"][None, None, :], (B, 1, width)).astype(jnp.float32)
    tokens = jnp.concatenate([cls, emb], axis=1)                       # [B, L, width]
    tokens = jnp.pad(tokens, ((0, 0), (0, Lp - L), (0, 0)))            # [B, Lp, width]
    pos = jnp.pad(params["pos"], ((0, Lp - L), (0, 0)))

    block_ws = [_prepare_block_weights(lp) for lp in params["blocks"]]
    pre = (pos, params["ln_pre_g"], params["ln_pre_b"])
    post = (params["ln_post_g"], params["ln_post_b"], params["proj"].astype(jnp.bfloat16))

    # --- transformer blocks (pre_ln fused into block 0, ln_post+proj into the last)
    for l in range(layers):
        tokens = run_block(tokens, block_ws[l], n_head=heads, valid_len=L,
                           pre=pre if l == 0 else None,
                           post=post if l == layers - 1 else None)
    return tokens[:, 0, :]          # [B, output_dim]: last block emitted the projected CLS row


# -----------------------------------------------------------------------------
# Pure-JAX reference (same math functions / same bf16 casts, no Pallas)
# -----------------------------------------------------------------------------
def reference_forward(params, x, *, patch_size, heads, layers):
    B, C, H, W = x.shape
    gh, gw = H // patch_size, W // patch_size
    Np = gh * gw
    width = params["conv_w"].shape[0]
    L = Np + 1

    patches = x.reshape(B, C, gh, patch_size, gw, patch_size)
    patches = patches.transpose(0, 2, 4, 1, 3, 5).reshape(B * Np, C * patch_size * patch_size)
    w_patch = params["conv_w"].reshape(width, -1).T
    emb = jnp.dot(patches.astype(jnp.bfloat16), w_patch.astype(jnp.bfloat16),
                  preferred_element_type=jnp.float32).reshape(B, Np, width)

    cls = jnp.broadcast_to(params["cls"][None, None, :], (B, 1, width)).astype(jnp.float32)
    tokens = jnp.concatenate([cls, emb], axis=1)
    tokens = tokens + params["pos"][None, :, :]
    tokens = _layernorm(tokens, params["ln_pre_g"], params["ln_pre_b"])

    block_ws = [_prepare_block_weights(lp) for lp in params["blocks"]]
    for l in range(layers):
        tokens = jnp.stack(
            [_block_math(tokens[b], block_ws[l], n_head=heads, valid_len=L,
                         approx_recip=False) for b in range(B)], axis=0)

    cls_tok = _layernorm(tokens[:, 0, :], params["ln_post_g"], params["ln_post_b"])
    return jnp.dot(cls_tok.astype(jnp.bfloat16), params["proj"].astype(jnp.bfloat16),
                   preferred_element_type=jnp.float32)


# -----------------------------------------------------------------------------
# Deterministic parameter init (shapes follow VisionTransformer.__init__ / torch layout)
# -----------------------------------------------------------------------------
def init_params(key, *, input_resolution, patch_size, width, layers, heads, output_dim):
    scale = width ** -0.5
    L = (input_resolution // patch_size) ** 2 + 1
    keys = iter(jax.random.split(key, 16 + 8 * layers))

    def nrm(shape, s):
        return (jax.random.normal(next(keys), shape, jnp.float32) * s).astype(jnp.float32)

    params = {
        "conv_w": nrm((width, 3, patch_size, patch_size), 0.02),
        "cls": nrm((width,), scale),
        "pos": nrm((L, width), scale),
        "ln_pre_g": jnp.ones((1, width), jnp.float32),
        "ln_pre_b": jnp.zeros((1, width), jnp.float32),
        "ln_post_g": jnp.ones((1, width), jnp.float32),
        "ln_post_b": jnp.zeros((1, width), jnp.float32),
        "proj": nrm((width, output_dim), scale),
        "blocks": [],
    }
    for _ in range(layers):
        params["blocks"].append({
            "ln1_g": jnp.ones((1, width), jnp.float32),
            "ln1_b": jnp.zeros((1, width), jnp.float32),
            "wqkv": nrm((3 * width, width), 0.02),      # in_proj_weight
            "bqkv": nrm((1, 3 * width), 0.02),
            "wo": nrm((width, width), 0.02),            # out_proj.weight
            "bo": nrm((1, width), 0.02),
            "ln2_g": jnp.ones((1, width), jnp.float32),
            "ln2_b": jnp.zeros((1, width), jnp.float32),
            "w1": nrm((4 * width, width), 0.02),        # c_fc
            "b1": nrm((1, 4 * width), 0.02),
            "w2": nrm((width, 4 * width), 0.02),        # c_proj
            "b2": nrm((1, width), 0.02),
        })
    return params


# -----------------------------------------------------------------------------
if __name__ == "__main__":
    # Small config: 16x16 image, 8x8 patches -> 4 patches + CLS = 5 tokens (padded to 8)
    B = 2
    input_resolution = 16
    patch_size = 8
    width = 32
    layers = 2
    heads = 4
    output_dim = 16

    key = jax.random.PRNGKey(0)
    k_param, k_x = jax.random.split(key)
    params = init_params(k_param, input_resolution=input_resolution,
                         patch_size=patch_size, width=width, layers=layers,
                         heads=heads, output_dim=output_dim)
    x = jax.random.normal(k_x, (B, 3, input_resolution, input_resolution), jnp.float32)

    out = jax.block_until_ready(
        vit_forward(params, x, patch_size=patch_size, heads=heads, layers=layers))
    ref = jax.block_until_ready(
        reference_forward(params, x, patch_size=patch_size, heads=heads, layers=layers))

    assert out.shape == (B, output_dim)
    # bf16 MXU operands + approx softmax reciprocal in the kernel -> relaxed tolerance.
    assert jnp.allclose(out, ref, atol=2e-2, rtol=2e-2), (
        f"Pallas output mismatch vs reference: max|diff|={jnp.max(jnp.abs(out - ref))}")
    print("KERNEL_OK")
</pallas_src>

<mosaic_0001>
module attributes {stable_mosaic.version = 11 : i64} {
  func.func @patch_embed_kernel(%arg0: i32, %arg1: memref<8x256xbf16, #tpu.memory_space<vmem>>, %arg2: memref<256x32xbf16, #tpu.memory_space<vmem>>, %arg3: memref<8x32xf32, #tpu.memory_space<vmem>>) attributes {dimension_semantics = [#tpu.dimension_semantics<parallel>], iteration_bounds = array<i64: 1>, scalar_prefetch = 0 : i64, scratch_operands = 0 : i64, tpu.core_type = #tpu.core_type<tc>, window_params = [{transform_indices = @transform_0, window_bounds = array<i64: 8, 256>}, {pipeline_mode = #tpu.pipeline_mode<synchronous>, transform_indices = @transform_1, window_bounds = array<i64: 256, 32>}, {transform_indices = @transform_2, window_bounds = array<i64: 8, 32>}]} {
    %c0 = arith.constant 0 : index
    %c0_0 = arith.constant 0 : index
    %0 = vector.load %arg1[%c0, %c0_0] : memref<8x256xbf16, #tpu.memory_space<vmem>>, vector<8x256xbf16>
    %c0_1 = arith.constant 0 : index
    %c0_2 = arith.constant 0 : index
    %1 = vector.load %arg2[%c0_1, %c0_2] : memref<256x32xbf16, #tpu.memory_space<vmem>>, vector<256x32xbf16>
    %cst = arith.constant dense<0.000000e+00> : vector<8x32xf32>
    %2 = tpu.matmul %0, %1, %cst {dimension_numbers = #tpu.dot_dimension_numbers<[1], [0], [0], [1], [0, 0, 1, 1], [], []>} : vector<8x256xbf16>, vector<256x32xbf16>, vector<8x32xf32> -> vector<8x32xf32>
    %c0_3 = arith.constant 0 : index
    %c0_4 = arith.constant 0 : index
    %3 = vector.load %arg3[%c0_3, %c0_4] : memref<8x32xf32, #tpu.memory_space<vmem>>, vector<8x32xf32>
    tpu.vector_store %arg3[%c0_3, %c0_4], %2 {strides = array<i32>} : memref<8x32xf32, #tpu.memory_space<vmem>>, vector<8x32xf32>,
    return
  }
  func.func @transform_0(%arg0: i32) -> (i32, i32) {
    %c0_i32 = arith.constant 0 : i32
    %c0_i32_0 = arith.constant 0 : i32
    return %arg0, %c0_i32 : i32, i32
  }
  func.func @transform_1(%arg0: i32) -> (i32, i32) {
    %c0_i32 = arith.constant 0 : i32
    %c0_i32_0 = arith.constant 0 : i32
    %c0_i32_1 = arith.constant 0 : i32
    return %c0_i32, %c0_i32_0 : i32, i32
  }
  func.func @transform_2(%arg0: i32) -> (i32, i32) {
    %c0_i32 = arith.constant 0 : i32
    %c0_i32_0 = arith.constant 0 : i32
    return %arg0, %c0_i32 : i32, i32
  }
}

</mosaic_0001>

<bundles_post_ra>
// kernel: tpu_custom_call.1
= control target key start
LH: loop header
LB: loop body
LE: loop exit
PB: predicated region body
PF: predicated region fallthrough
CT: control target
= control target key end

     0   :  { %s356_s0 = inlined_call_operand.vmem [shape: bf16[8,256], index: 0, kind: input, shape index: {}]   ;;  %s357_s1 = inlined_call_operand.vmem [shape: bf16[256,32], index: 1, kind: input, shape index: {}]   ;;  %s358_s2 = inlined_call_operand.hbm [shape: f32[8,32], index: 2, kind: output, shape index: {}]  }
   0x1   :  { %v246_v0 = vld [vmem:[%s357_s1 + $0x78] sm:$0xff]   ;;  %v248_v2 = vld [vmem:[%s357_s1 + $0x70] sm:$0xff]   ;;  %v250_v4 = vld [vmem:[%s357_s1 + $0x68] sm:$0xff]  }
   0x2   :  { %v247_v1 = vld [vmem:[%s357_s1 + $0x38] sm:$0xff]   ;;  %223 = vmatprep.subr.bf16.mxu0 %v246_v0  ;;  %v249_v3 = vld [vmem:[%s357_s1 + $0x30] sm:$0xff]   ;;  %v251_v5 = vld [vmem:[%s357_s1 + $0x28] sm:$0xff]  }
   0x3   :  { %224 = vmatpush3.bf16.msra.mxu0 %v247_v1  ;;  %v252_v6 = vld [vmem:[%s357_s1 + $0x60] sm:$0xff]   ;;  %v254_v8 = vld [vmem:[%s357_s1 + $0x58] sm:$0xff]   ;;  %v256_v10 = vld [vmem:[%s357_s1 + $0x50] sm:$0xff]  }
   0x4   :  { %225 = vmatprep.subr.bf16.mxu0 %v248_v2  ;;  %v253_v7 = vld [vmem:[%s357_s1 + $0x20] sm:$0xff]   ;;  %v255_v9 = vld [vmem:[%s357_s1 + $0x18] sm:$0xff]  }
   0x5   :  { %v13_v11 = vld [vmem:[%s356_s0] sm:$0xff] }
   0x7   :  { %226 = vmatpush3.bf16.msra.mxu0 %v249_v3 }
   0x8   :  { %227 = vmatprep.subr.bf16.mxu0 %v250_v4 }
   0xb   :  { %228 = vmatpush3.bf16.msra.mxu0 %v251_v5 }
   0xc   :  { %229 = vmatprep.subr.bf16.mxu0 %v252_v6 }
   0xf   :  { %230 = vmatpush3.bf16.msra.mxu0 %v253_v7 }
  0x10   :  { %231 = vmatprep.subr.bf16.mxu0 %v254_v8 }
  0x11   :  { %7 = vsyncpa [#allocation3], 0  ;;  %v206_v12 = vcombine.high %v13_v11, %v13_v11  ;;  %v257_v13 = vld [vmem:[%s357_s1 + $0x10] sm:$0xff]   ;;  %v258_v14 = vld [vmem:[%s357_s1 + $0x48] sm:$0xff]   ;;  %v205_v18 = vcombine.low %v13_v11, %v13_v11  ;;  %s286_s14 = smov [#allocation2]   ;;  %vm189_vm0 = vcmask 261120  }
  0x12   :  { %v259_v15 = vld [vmem:[%s357_s1 + $0x8] sm:$0xff]   ;;  %v260_v16 = vld [vmem:[%s357_s1 + $0x40] sm:$0xff]   ;;  %s197_s15 = sshll.u32 %s286_s14, 4  ;;  %s198_s15 = int_to_ptr.vmem [resolvable:$true] %s197_s15 }
  0x13   :  { %232 = vmatpush3.bf16.msra.mxu0 %v255_v9  ;;  %181 = vmatprep.mubr.bf16.mxu0 %v206_v12  ;;  %v261_v17 = vld [vmem:[%s357_s1] sm:$0xff]   ;;  %s264_s16 = scalar_lea.vmem %s198_s15, 128  ;;  %p269_p1 = scmp.lt.s32.totalorder %s198_s15, %s198_s15 }
  0x14   :  { %233 = vmatprep.subr.bf16.mxu0 %v256_v10  ;;  %p265_p0 = scmp.ne.s32.totalorder %s198_s15, %s264_s16  ;;  %p270_p2 = scmp.lt.s32.totalorder %s264_s16, %s264_s16 }
  0x16   :  { %p271_p3 = por %p270_p2, %p269_p1 }
  0x17   :  { %234 = vmatpush3.bf16.msra.mxu0 %v257_v13 }
  0x18   :  { %235 = vmatprep.subr.bf16.mxu0 %v258_v14  ;;  %p272_p4 = pnand %p271_p3, %p265_p0 }
  0x1b   :  { %236 = vmatpush3.bf16.msra.mxu0 %v259_v15 }
  0x1c   :  { %237 = vmatprep.subr.bf16.mxu0 %v260_v16 }
  0x1f   :  { %238 = vmatpush3.bf16.msra.mxu0 %v261_v17 }
  0x22   :  { %182 = vmatmul.mubr.bf16.vlgmr.msra.gmra.mxu0 %v205_v18 }
  0xe2   :  { %v239_v19 = vpop.f32.mrf.mxu0 }
  0xe4   :  { %v240_v20 = vpop.f32.mrf.mxu0 }
  0xe5   :  { %v241_v21 = vadd.f32 %v240_v20, %v239_v19 }
  0xe6   :  { %v242_v22 = vpop.f32.mrf.mxu0 }
  0xe7   :  { %190 = vst.msk [vmem:[#allocation2] sm:$0xff] %vm189_vm0, %v241_v21 }
  0xe8   :  { %v243_v23 = vpop.f32.mrf.mxu0 }
  0xe9   :  { %275 = shalt.err (!%p272_p4)
}
  0xea   :  { %200 = dma.vmem_to_hbm [thread:$0]  %s198_s15, 128, %s358_s2, [#allocation3]  }
  0xeb   :  { %284 = dma.done.wait [#allocation3], 128  }
  0xec   :  { %285 = vsyncadd [#allocation3], 4294967168 }
  0xed   :  { %204 = vsyncpa [#allocation3], 1 }

</bundles_post_ra>
